<compile_context>
chip_gen: v5e
topology: v5e:2x2
jax: 0.10.0
libtpu: 0.0.40
codegen_flags: <defaults>
</compile_context>

<pallas_src>
import functools

import jax
import jax.numpy as jnp
import numpy as np
from jax.experimental import pallas as pl
from jax.experimental.pallas import tpu as pltpu


def _round_up(x, m):
    return ((x + m - 1) // m) * m


def _sublane(dtype):
    itemsize = jnp.dtype(dtype).itemsize
    if itemsize >= 4:
        return 8
    if itemsize == 2:
        return 16
    return 32


def _vmem_budget_bytes():
    cap = 64 << 20  # conservative default (v7x per-TC VMEM)
    try:
        info = pltpu.get_tpu_info()
        cap = int(getattr(info, "vmem_capacity_bytes", cap))
    except Exception:
        pass
    # Leave headroom for compiler-internal scratch / pipeline bookkeeping:
    # never grant 100% of physical VMEM.
    return max(32 << 20, min(cap - (8 << 20), int(cap * 0.85)))


def _largest_divisor_tile(total, cap, step=128):
    """Largest multiple of `step` that divides `total` and is <= cap."""
    best = step
    t = step
    while t <= min(total, cap):
        if total % t == 0:
            best = t
        t += step
    return best


def _pick_tiles(B, F, T, dtype):
    """Static tile planning.  Returns (tm, tn, tk, vmem_limit_bytes)."""
    itemsize = jnp.dtype(dtype).itemsize
    sub = _sublane(dtype)
    budget = _vmem_budget_bytes()

    B_a = _round_up(max(B, 1), sub)
    T_a = _round_up(T, 128)
    F_a = _round_up(F, 128)

    tm = min(512, B_a)

    # Full-T output tile when it fits: W streamed exactly once, no x
    # re-streaming across the j axis.
    tn = T_a if T_a <= 2048 else _largest_divisor_tile(T_a, 1024)
    # Keep >= 2 blocks on a "parallel" axis when the grid would otherwise be
    # (1, 1, K) so both v7x TensorCores get work (no-op on v5e/v6e).
    if B_a <= tm and tn == T_a and T_a >= 256:
        tn = _largest_divisor_tile(T_a, T_a // 2)

    tk_cap = 2048 if itemsize >= 4 else 4096
    tk = min(tk_cap, F_a)

    use_acc = jnp.dtype(dtype) != jnp.dtype(jnp.float32)

    def tile_bytes(tm_, tn_, tk_):
        b = 2 * (tm_ * tk_ + tk_ * tn_ + tn_ + tm_ * tn_) * itemsize
        if use_acc:
            b += tm_ * tn_ * 4
        return b

    # Shrink tk, then tn, then tm until the double-buffered tile set fits.
    while tk > 128 and tile_bytes(tm, tn, tk) > budget:
        tk = max(128, _round_up(tk // 2, 128))
    while tn > 128 and tile_bytes(tm, tn, tk) > budget:
        tn = max(128, _round_up(tn // 2, 128))
    while tm > sub and tile_bytes(tm, tn, tk) > budget:
        tm = max(sub, _round_up(tm // 2, sub))

    vmem_limit = int(min(max(tile_bytes(tm, tn, tk) + (4 << 20), 32 << 20),
                         budget))
    return tm, tn, tk, vmem_limit


def _head_kernel_f32(x_ref, w_ref, b_ref, o_ref):
    # x: [tm, tk]  w: [tk, tn]  b: [1, tn]  o: [tm, tn] f32, resident across k.
    k = pl.program_id(2)

    @pl.when(k == 0)
    def _():
        o_ref[...] = jnp.zeros_like(o_ref)

    o_ref[...] += jnp.dot(x_ref[...], w_ref[...],
                          preferred_element_type=jnp.float32)

    @pl.when(k == pl.num_programs(2) - 1)
    def _():
        o_ref[...] += b_ref[...]


def _head_kernel_acc(x_ref, w_ref, b_ref, o_ref, acc_ref):
    # Non-f32 output: accumulate in an f32 VMEM scratch, cast at the end.
    k = pl.program_id(2)

    @pl.when(k == 0)
    def _():
        acc_ref[...] = jnp.zeros_like(acc_ref)

    acc_ref[...] += jnp.dot(x_ref[...], w_ref[...],
                            preferred_element_type=jnp.float32)

    @pl.when(k == pl.num_programs(2) - 1)
    def _():
        o_ref[...] = (acc_ref[...]
                      + b_ref[...].astype(jnp.float32)).astype(o_ref.dtype)


def prepare_head_params(weight, bias, *, batch_hint=8, dtype=None):
    """Pad + transpose the *static* Linear parameters exactly once (outside
    the per-step jit).  weight: [T, F] (PyTorch layout), bias: [T].
    Returns (w_fp [F_p, T_p], b_p [1, T_p], plan)."""
    T, F = weight.shape
    if dtype is None:
        dtype = weight.dtype
    tm, tn, tk, vmem_limit = _pick_tiles(batch_hint, F, T, dtype)
    F_p = _round_up(_round_up(F, 128), tk)
    T_p = _round_up(_round_up(T, 128), tn)
    w_fp = jnp.pad(weight.astype(dtype), ((0, T_p - T), (0, F_p - F))).T
    w_fp = jax.block_until_ready(jnp.asarray(w_fp))     # materialize once
    b_p = jnp.pad(bias.astype(dtype), (0, T_p - T)).reshape(1, T_p)
    plan = dict(tm=tm, tn=tn, tk=tk, out_dim=T, vmem_limit=vmem_limit)
    return w_fp, b_p, plan


@functools.partial(jax.jit,
                   static_argnames=("tm", "tn", "tk", "out_dim", "vmem_limit"))
def _head_apply(x, w_fp, b_p, *, tm, tn, tk, out_dim, vmem_limit):
    B = x.shape[0]
    F = int(np.prod(x.shape[1:]))
    F_p, T_p = w_fp.shape
    dtype = x.dtype
    itemsize = jnp.dtype(dtype).itemsize

    B_p = _round_up(max(B, 1), tm)

    x_flat = x.reshape(B, F)                      # nn.Flatten(start_dim=1)
    if (B_p, F_p) != (B, F):
        # Zero rows/cols contribute 0 to the dot; sliced off below.
        x_flat = jnp.pad(x_flat, ((0, B_p - B), (0, F_p - F)))

    grid = (B_p // tm, T_p // tn, F_p // tk)

    use_acc = jnp.dtype(dtype) != jnp.dtype(jnp.float32)
    kernel = _head_kernel_acc if use_acc else _head_kernel_f32
    scratch = [pltpu.VMEM((tm, tn), jnp.float32)] if use_acc else []

    cost = pl.CostEstimate(
        flops=2 * B_p * F_p * T_p,
        transcendentals=0,
        bytes_accessed=itemsize * (B_p * F_p + F_p * T_p + B_p * T_p + T_p),
    )

    out = pl.pallas_call(
        kernel,
        out_shape=jax.ShapeDtypeStruct((B_p, T_p), dtype),
        grid_spec=pltpu.PrefetchScalarGridSpec(
            num_scalar_prefetch=0,
            grid=grid,
            in_specs=[
                pl.BlockSpec((tm, tk), lambda i, j, k: (i, k)),   # x  [B_p,F_p]
                pl.BlockSpec((tk, tn), lambda i, j, k: (k, j)),   # W  [F_p,T_p]
                pl.BlockSpec((1, tn), lambda i, j, k: (0, j)),    # bias
            ],
            out_specs=pl.BlockSpec((tm, tn), lambda i, j, k: (i, j)),
            scratch_shapes=scratch,
        ),
        compiler_params=pltpu.CompilerParams(
            dimension_semantics=("parallel", "parallel", "arbitrary"),
            vmem_limit_bytes=vmem_limit,
        ),
        cost_estimate=cost,
    )(x_flat, w_fp, b_p)

    return out[:B, :out_dim]


class ClassificationHeadPallas:
    """flatten -> Linear(nf*n_vars, target_window) -> Dropout(head_dropout=0).
    Pads/transposes the static weight exactly once at construction."""

    def __init__(self, weight, bias, *, batch_hint=8, dtype=None):
        self.w_fp, self.b_p, self.plan = prepare_head_params(
            weight, bias, batch_hint=batch_hint, dtype=dtype)

    def __call__(self, x):
        # TODO(synk): nn.Dropout(head_dropout) is identity for head_dropout=0 /
        # eval mode; training-mode dropout would use pltpu.prng_random_bits.
        return _head_apply(x, self.w_fp, self.b_p, **self.plan)


def classification_head(x, weight, bias):
    """One-shot convenience wrapper.  For repeated calls, construct
    ClassificationHeadPallas once so the weight pad/transpose is amortized."""
    head = ClassificationHeadPallas(weight, bias, batch_hint=x.shape[0],
                                    dtype=x.dtype)
    return head(x)


def init_params(key, n_vars, nf, target_window, dtype=jnp.float32):
    """Deterministic init matching the PyTorch module's __init__ shapes."""
    fan_in = nf * n_vars
    fan_out = target_window
    k_w, k_b = jax.random.split(key)
    # xavier_uniform_ on weight [target_window, fan_in]
    limit = float(np.sqrt(6.0 / (fan_in + fan_out)))
    weight = jax.random.uniform(
        k_w, (target_window, fan_in), dtype=dtype, minval=-limit, maxval=limit)
    # PyTorch Linear default bias init: U(-1/sqrt(fan_in), 1/sqrt(fan_in))
    b_lim = float(1.0 / np.sqrt(fan_in))
    bias = jax.random.uniform(
        k_b, (target_window,), dtype=dtype, minval=-b_lim, maxval=b_lim)
    return weight, bias


if __name__ == "__main__":
    key = jax.random.PRNGKey(0)
    k_x, k_p = jax.random.split(key)

    # Small shapes consistent with the module: B=2, n_vars=4, nf=32 -> F=128.
    B, n_vars, nf, target_window = 2, 4, 32, 8
    x = jax.random.normal(k_x, (B, n_vars, nf), dtype=jnp.float32)
    weight, bias = init_params(k_p, n_vars, nf, target_window)

    head = ClassificationHeadPallas(weight, bias, batch_hint=B)
    out = jax.block_until_ready(head(x))

    # Reference in plain JAX (same math as torch: flatten -> x @ W.T + b).
    ref = x.reshape(B, -1) @ weight.T + bias
    np.testing.assert_allclose(np.asarray(out), np.asarray(ref),
                               rtol=1e-5, atol=1e-5)
    print("KERNEL_OK")
</pallas_src>

<mosaic_0001>
module attributes {stable_mosaic.version = 11 : i64} {
  func.func @_head_kernel_f32(%arg0: i32, %arg1: i32, %arg2: i32, %arg3: memref<8x128xf32, #tpu.memory_space<vmem>>, %arg4: memref<128x128xf32, #tpu.memory_space<vmem>>, %arg5: memref<1x128xf32, #tpu.memory_space<vmem>>, %arg6: memref<8x128xf32, #tpu.memory_space<vmem>>) attributes {dimension_semantics = [#tpu.dimension_semantics<parallel>, #tpu.dimension_semantics<parallel>, #tpu.dimension_semantics<arbitrary>], iteration_bounds = array<i64: 1, 1, 1>, scalar_prefetch = 0 : i64, scratch_operands = 0 : i64, tpu.core_type = #tpu.core_type<tc>, window_params = [{transform_indices = @transform_0, window_bounds = array<i64: 8, 128>}, {transform_indices = @transform_1, window_bounds = array<i64: 128, 128>}, {transform_indices = @transform_2, window_bounds = array<i64: 1, 128>}, {transform_indices = @transform_3, window_bounds = array<i64: 8, 128>}]} {
    %c0_i32 = arith.constant 0 : i32
    %0 = arith.cmpi eq, %arg2, %c0_i32 : i32
    %1 = arith.extui %0 : i1 to i32
    %c0_i32_0 = arith.constant 0 : i32
    %2 = arith.cmpi ne, %1, %c0_i32_0 : i32
    scf.if %2 {
      %cst_10 = arith.constant 0.000000e+00 : f32
      %12 = vector.broadcast %cst_10 : f32 to vector<8x128xf32>
      %c0_11 = arith.constant 0 : index
      %c0_12 = arith.constant 0 : index
      %13 = vector.load %arg6[%c0_11, %c0_12] : memref<8x128xf32, #tpu.memory_space<vmem>>, vector<8x128xf32>
      tpu.vector_store %arg6[%c0_11, %c0_12], %12 {strides = array<i32>} : memref<8x128xf32, #tpu.memory_space<vmem>>, vector<8x128xf32>,
    } else {
    }
    %c0 = arith.constant 0 : index
    %c0_1 = arith.constant 0 : index
    %3 = vector.load %arg6[%c0, %c0_1] : memref<8x128xf32, #tpu.memory_space<vmem>>, vector<8x128xf32>
    %c0_2 = arith.constant 0 : index
    %c0_3 = arith.constant 0 : index
    %4 = vector.load %arg3[%c0_2, %c0_3] : memref<8x128xf32, #tpu.memory_space<vmem>>, vector<8x128xf32>
    %c0_4 = arith.constant 0 : index
    %c0_5 = arith.constant 0 : index
    %5 = vector.load %arg4[%c0_4, %c0_5] : memref<128x128xf32, #tpu.memory_space<vmem>>, vector<128x128xf32>
    %cst = arith.constant dense<0.000000e+00> : vector<8x128xf32>
    %6 = tpu.matmul %4, %5, %cst {dimension_numbers = #tpu.dot_dimension_numbers<[1], [0], [0], [1], [0, 0, 1, 1], [], []>} : vector<8x128xf32>, vector<128x128xf32>, vector<8x128xf32> -> vector<8x128xf32>
    %7 = arith.addf %3, %6 : vector<8x128xf32>
    %c0_6 = arith.constant 0 : index
    %c0_7 = arith.constant 0 : index
    %8 = vector.load %arg6[%c0_6, %c0_7] : memref<8x128xf32, #tpu.memory_space<vmem>>, vector<8x128xf32>
    tpu.vector_store %arg6[%c0_6, %c0_7], %7 {strides = array<i32>} : memref<8x128xf32, #tpu.memory_space<vmem>>, vector<8x128xf32>,
    %c0_i32_8 = arith.constant 0 : i32
    %9 = arith.cmpi eq, %arg2, %c0_i32_8 : i32
    %10 = arith.extui %9 : i1 to i32
    %c0_i32_9 = arith.constant 0 : i32
    %11 = arith.cmpi ne, %10, %c0_i32_9 : i32
    scf.if %11 {
      %c0_10 = arith.constant 0 : index
      %c0_11 = arith.constant 0 : index
      %12 = vector.load %arg6[%c0_10, %c0_11] : memref<8x128xf32, #tpu.memory_space<vmem>>, vector<8x128xf32>
      %c0_12 = arith.constant 0 : index
      %c0_13 = arith.constant 0 : index
      %13 = vector.load %arg5[%c0_12, %c0_13] : memref<1x128xf32, #tpu.memory_space<vmem>>, vector<1x128xf32>
      %14 = vector.broadcast %13 : vector<1x128xf32> to vector<8x128xf32>
      %15 = arith.addf %12, %14 : vector<8x128xf32>
      %c0_14 = arith.constant 0 : index
      %c0_15 = arith.constant 0 : index
      %16 = vector.load %arg6[%c0_14, %c0_15] : memref<8x128xf32, #tpu.memory_space<vmem>>, vector<8x128xf32>
      tpu.vector_store %arg6[%c0_14, %c0_15], %15 {strides = array<i32>} : memref<8x128xf32, #tpu.memory_space<vmem>>, vector<8x128xf32>,
    } else {
    }
    return
  }
  func.func @transform_0(%arg0: i32, %arg1: i32, %arg2: i32) -> (i32, i32) {
    %c0_i32 = arith.constant 0 : i32
    return %arg0, %arg2 : i32, i32
  }
  func.func @transform_1(%arg0: i32, %arg1: i32, %arg2: i32) -> (i32, i32) {
    %c0_i32 = arith.constant 0 : i32
    return %arg2, %arg1 : i32, i32
  }
  func.func @transform_2(%arg0: i32, %arg1: i32, %arg2: i32) -> (i32, i32) {
    %c0_i32 = arith.constant 0 : i32
    %c0_i32_0 = arith.constant 0 : i32
    return %c0_i32, %arg1 : i32, i32
  }
  func.func @transform_3(%arg0: i32, %arg1: i32, %arg2: i32) -> (i32, i32) {
    %c0_i32 = arith.constant 0 : i32
    return %arg0, %arg1 : i32, i32
  }
}

</mosaic_0001>

<bundles_post_ra>
// kernel: _head_apply.1
= control target key start
LH: loop header
LB: loop body
LE: loop exit
PB: predicated region body
PF: predicated region fallthrough
CT: control target
= control target key end

     0   :  { %8 = vsyncpa [#allocation3], 0  ;;  %s121_s15 = smov [#allocation2]   ;;  %s122_s17 = smov 128   ;;  %s156_s0 = inlined_call_operand.vmem [shape: f32[8,128], index: 0, kind: input, shape index: {}]   ;;  %s157_s1 = inlined_call_operand.hbm [shape: f32[128,128], index: 1, kind: input, shape index: {}]   ;;  %s158_s2 = inlined_call_operand.vmem [shape: f32[1,128], index: 2, kind: input, shape index: {}]   ;;  %s159_s3 = inlined_call_operand.vmem [shape: f32[8,128], index: 3, kind: output, shape index: {}]  }
   0x1   :  { %s15_s14 = sshll.u32 %s157_s1, 4  ;;  %s17_s16 = sshll.u32 %s121_s15, 4  ;;  %s16_s14 = int_to_ptr.hbm [resolvable:$true] %s15_s14  ;;  %s18_s16 = int_to_ptr.vmem [resolvable:$true] %s17_s16 }
   0x2   :  { %s123_s18 = smov 8  }
   0x3   :  { %23 = dma.hbm_to_vmem [thread:$0]  %s16_s14, 2048, %s18_s16, [#allocation3], %s122_s17, %s122_s17, %s123_s18  }
   0x4   :  { %119 = dma.done.wait [#allocation3], 2048  }
   0x5   :  { %120 = vsyncadd [#allocation3], 4294965248  ;;  %v52_v0 = vld [vmem:[#allocation2 + $0x78] sm:$0xff]  ;;  %v51_v1 = vld [vmem:[#allocation2 + $0x70] sm:$0xff] }
   0x6   :  { %53 = vmatpush.msra.mxu0 %v52_v0  ;;  %v50_v2 = vld [vmem:[#allocation2 + $0x68] sm:$0xff]  ;;  %v49_v3 = vld [vmem:[#allocation2 + $0x60] sm:$0xff]  ;;  %v48_v4 = vld [vmem:[#allocation2 + $0x58] sm:$0xff] }
   0x7   :  { %v47_v5 = vld [vmem:[#allocation2 + $0x50] sm:$0xff]  ;;  %v46_v6 = vld [vmem:[#allocation2 + $0x48] sm:$0xff]  ;;  %v45_v7 = vld [vmem:[#allocation2 + $0x40] sm:$0xff] }
   0x8   :  { %54 = vmatpush.msra.mxu0 %v51_v1  ;;  %v44_v8 = vld [vmem:[#allocation2 + $0x38] sm:$0xff]  ;;  %v43_v9 = vld [vmem:[#allocation2 + $0x30] sm:$0xff]  ;;  %v42_v10 = vld [vmem:[#allocation2 + $0x28] sm:$0xff] }
   0x9   :  { %v41_v11 = vld [vmem:[#allocation2 + $0x20] sm:$0xff]  ;;  %v40_v12 = vld [vmem:[#allocation2 + $0x18] sm:$0xff]  ;;  %v39_v13 = vld [vmem:[#allocation2 + $0x10] sm:$0xff] }
   0xa   :  { %55 = vmatpush.msra.mxu0 %v50_v2  ;;  %v38_v14 = vld [vmem:[#allocation2 + $0x8] sm:$0xff]  ;;  %v37_v15 = vld [vmem:[#allocation2] sm:$0xff] }
   0xb   :  { %v36_v16 = vld [vmem:[%s156_s0] sm:$0xff] }
   0xc   :  { %56 = vmatpush.msra.mxu0 %v49_v3  ;;  %v94_v17 = vld [vmem:[%s158_s2] ss:$0 sm:$0xff] }
   0xe   :  { %57 = vmatpush.msra.mxu0 %v48_v4 }
  0x10   :  { %58 = vmatpush.msra.mxu0 %v47_v5 }
  0x12   :  { %59 = vmatpush.msra.mxu0 %v46_v6 }
  0x14   :  { %60 = vmatpush.msra.mxu0 %v45_v7 }
  0x16   :  { %61 = vmatpush.msra.mxu0 %v44_v8 }
  0x18   :  { %62 = vmatpush.msra.mxu0 %v43_v9 }
  0x1a   :  { %63 = vmatpush.msra.mxu0 %v42_v10 }
  0x1c   :  { %64 = vmatpush.msra.mxu0 %v41_v11 }
  0x1e   :  { %65 = vmatpush.msra.mxu0 %v40_v12 }
  0x20   :  { %66 = vmatpush.msra.mxu0 %v39_v13 }
  0x22   :  { %67 = vmatpush.msra.mxu0 %v38_v14 }
  0x24   :  { %68 = vmatpush.msra.mxu0 %v37_v15 }
  0x25   :  { %69 = vmatmul.f32.vlgmr.msra.gmra.mxu0 %v36_v16 }
  0xa2   :  { %v70_v18 = vpop.f32.mrf.mxu0 }
  0xa3   :  { %v83_v19 = vadd.f32 %v94_v17, %v70_v18 }
  0xa5   :  { %84 = vst [vmem:[%s159_s3] sm:$0xff] %v83_v19 }
  0xa6   :  { %89 = vsyncpa [#allocation3], 1 }

</bundles_post_ra>
